<compile_context>
chip_gen: v7x
topology: tpu7x:2x2x1
jax: 0.10.0
libtpu: 0.0.40
codegen_flags: <defaults>
</compile_context>

<pallas_src>
import jax
import jax.numpy as jnp
from jax import lax
from jax.experimental import pallas as pl
from jax.experimental.pallas import tpu as pltpu

HIDDEN = 30  # fc1 output width: nn.Linear(state_dim + action_dim, 30)


def _round_up(n, m):
    return ((n + m - 1) // m) * m


def critic_kernel(x_ref, u_ref, w1x_ref, w1u_ref, b1_ref, w2_ref, b2_ref, q_ref):
    # fc1 on the MXU: concat([x, u]) @ W1^T  ==  x @ W1x + u @ W1u  (no concat op).
    h = jnp.dot(x_ref[...], w1x_ref[...], preferred_element_type=jnp.float32)
    h = h + jnp.dot(u_ref[...], w1u_ref[...], preferred_element_type=jnp.float32)
    h = jnp.maximum(h + b1_ref[...], 0.0)                       # bias + ReLU (VPU)
    # out layer (30 -> 1) emitted as a lane-dense (1, tb) row:
    #   q[0, b] = sum_k w2[0, k] * h[b, k]   (contract last dims on the MXU)
    q = lax.dot_general(w2_ref[...], h,
                        dimension_numbers=(((1,), (1,)), ((), ())),
                        preferred_element_type=jnp.float32)      # (1, tb)
    q_ref[0] = q + b2_ref[0, 0]                                  # scalar bias (SMEM)


def prepare_critic_params(w1, b1, w2, b2, state_dim):
    """One-time parameter layout prep (hoisted out of the hot forward path).

    PyTorch layouts: w1 (30, S+A), b1 (30,), w2 (1, 30), b2 (1,).
    Returns matmul-ready, VMEM/SMEM-friendly layouts:
      w1x: (S, 30)  fc1 weight block acting on the state
      w1u: (A, 30)  fc1 weight block acting on the action
      b1r: (1, 30)  fc1 bias row
      w2r: (1, 30)  out weight row
      b2s: (1, 1)   out bias scalar (lives in SMEM)
    """
    w1 = jnp.asarray(w1, jnp.float32)
    w1x = w1[:, :state_dim].T
    w1u = w1[:, state_dim:].T
    b1r = jnp.asarray(b1, jnp.float32).reshape(1, HIDDEN)
    w2r = jnp.asarray(w2, jnp.float32).reshape(1, HIDDEN)
    b2s = jnp.asarray(b2, jnp.float32).reshape(1, 1)
    return (w1x, w1u, b1r, w2r, b2s)


def _pick_tb(batch, tb_max):
    """Batch tile: as large as possible (amortize ~0.35us/step, ~85% of HBM
    roofline needs 512+ rows), multiple of 8, but keep >= 2 grid steps when the
    batch allows so the 'parallel' batch axis can shard across both
    TensorCores on v7x. tb_max=2048 keeps double-buffered VMEM at ~a few MiB
    (safe under v7x's 64 MiB / default scoped limits)."""
    if batch <= 16:
        return _round_up(max(batch, 1), 8)
    tb = _round_up(pl.cdiv(batch, 2), 8)
    return int(min(tb_max, tb))


def critic_forward(x, u, params, *, tb=None, tb_max=2048):
    """x: (B, state_dim), u: (B, action_dim). Returns q of shape (B, 1) float32."""
    w1x, w1u, b1r, w2r, b2s = params
    B, S = x.shape
    A = u.shape[1]

    if tb is None:
        tb = _pick_tb(B, tb_max)
    # Batch tile must be a multiple of 8 (sublane) and no larger than needed.
    tb = max(8, _round_up(min(tb, _round_up(B, 8)), 8))
    num_blocks = int(pl.cdiv(B, tb))

    q = pl.pallas_call(
        critic_kernel,
        out_shape=jax.ShapeDtypeStruct((num_blocks, 1, tb), jnp.float32),
        grid=(num_blocks,),
        in_specs=[
            pl.BlockSpec((tb, S), lambda i: (i, 0)),              # x: batch-tiled
            pl.BlockSpec((tb, A), lambda i: (i, 0)),              # u: batch-tiled
            pl.BlockSpec((S, HIDDEN), lambda i: (0, 0)),          # w1x: VMEM-resident
            pl.BlockSpec((A, HIDDEN), lambda i: (0, 0)),          # w1u: VMEM-resident
            pl.BlockSpec((1, HIDDEN), lambda i: (0, 0)),          # b1 row: resident
            pl.BlockSpec((1, HIDDEN), lambda i: (0, 0)),          # w2 row: resident
            pl.BlockSpec((1, 1), lambda i: (0, 0),
                         memory_space=pltpu.MemorySpace.SMEM),    # b2 scalar in SMEM
        ],
        out_specs=pl.BlockSpec((1, 1, tb), lambda i: (i, 0, 0)),  # lane-dense rows
        compiler_params=pltpu.CompilerParams(
            dimension_semantics=("parallel",)),                   # 2 TCs on v7x
    )(x, u, w1x, w1u, b1r, w2r, b2s)

    # (num_blocks, 1, tb) is row-major identical to (num_blocks*tb, 1);
    # drop the (tiny) tail of garbage rows from the partial final block.
    return q.reshape(num_blocks * tb, 1)[:B]


if __name__ == "__main__":
    # Small deterministic shapes; B chosen so the auto tile gives tb=104 and a
    # 2-step grid with a partial (out-of-bounds) final input block, exercising
    # padding-free tiling, the lane-dense output path and the parallel axis.
    B, STATE_DIM, ACTION_DIM = 200, 16, 4

    key = jax.random.PRNGKey(0)
    kx, ku, kw1, kb1, kw2, kb2 = jax.random.split(key, 6)

    x = jax.random.normal(kx, (B, STATE_DIM), dtype=jnp.float32)
    u = jax.random.normal(ku, (B, ACTION_DIM), dtype=jnp.float32)

    # Parameters: weights ~ N(0, 0.1) as in the module __init__;
    # biases use PyTorch Linear default U(-1/sqrt(fan_in), 1/sqrt(fan_in)).
    fan_in1 = STATE_DIM + ACTION_DIM
    w1 = 0.1 * jax.random.normal(kw1, (HIDDEN, fan_in1), dtype=jnp.float32)
    b1 = jax.random.uniform(kb1, (HIDDEN,), dtype=jnp.float32,
                            minval=-1.0 / jnp.sqrt(fan_in1),
                            maxval=1.0 / jnp.sqrt(fan_in1))
    w2 = 0.1 * jax.random.normal(kw2, (1, HIDDEN), dtype=jnp.float32)
    b2 = jax.random.uniform(kb2, (1,), dtype=jnp.float32,
                            minval=-1.0 / jnp.sqrt(HIDDEN),
                            maxval=1.0 / jnp.sqrt(HIDDEN))

    # Weight layout prep happens once, outside the hot loop.
    params = prepare_critic_params(w1, b1, w2, b2, STATE_DIM)

    q = critic_forward(x, u, params)
    q = jax.block_until_ready(q)

    # Pure-JAX reference of the exact PyTorch semantics.
    xu = jnp.concatenate([x, u], axis=1)
    h_ref = jnp.maximum(xu @ w1.T + b1, 0.0)
    q_ref = h_ref @ w2.T + b2
    assert q.shape == (B, 1)
    assert jnp.allclose(q, q_ref, atol=1e-4, rtol=1e-4), float(
        jnp.max(jnp.abs(q - q_ref)))

    print("KERNEL_OK")
</pallas_src>

<mosaic_0001>
module attributes {stable_mosaic.version = 11 : i64} {
  func.func @critic_kernel(%arg0: i32, %arg1: memref<104x16xf32, #tpu.memory_space<vmem>>, %arg2: memref<104x4xf32, #tpu.memory_space<vmem>>, %arg3: memref<16x30xf32, #tpu.memory_space<vmem>>, %arg4: memref<4x30xf32, #tpu.memory_space<vmem>>, %arg5: memref<1x30xf32, #tpu.memory_space<vmem>>, %arg6: memref<1x30xf32, #tpu.memory_space<vmem>>, %arg7: memref<1x1xf32, #tpu.memory_space<smem>>, %arg8: memref<1x1x104xf32, #tpu.memory_space<vmem>>) attributes {dimension_semantics = [#tpu.dimension_semantics<parallel>], iteration_bounds = array<i64: 2>, scalar_prefetch = 0 : i64, scratch_operands = 0 : i64, tpu.core_type = #tpu.core_type<tc>, window_params = [{transform_indices = @transform_0, window_bounds = array<i64: 104, 16>}, {transform_indices = @transform_1, window_bounds = array<i64: 104, 4>}, {pipeline_mode = #tpu.pipeline_mode<synchronous>, transform_indices = @transform_2, window_bounds = array<i64: 16, 30>}, {pipeline_mode = #tpu.pipeline_mode<synchronous>, transform_indices = @transform_3, window_bounds = array<i64: 4, 30>}, {pipeline_mode = #tpu.pipeline_mode<synchronous>, transform_indices = @transform_4, window_bounds = array<i64: 1, 30>}, {pipeline_mode = #tpu.pipeline_mode<synchronous>, transform_indices = @transform_5, window_bounds = array<i64: 1, 30>}, {transform_indices = @transform_6, window_bounds = array<i64: 1, 1>}, {transform_indices = @transform_7, window_bounds = array<i64: 1, 1, 104>}]} {
    %c0 = arith.constant 0 : index
    %c0_0 = arith.constant 0 : index
    %0 = vector.load %arg1[%c0, %c0_0] : memref<104x16xf32, #tpu.memory_space<vmem>>, vector<104x16xf32>
    %c0_1 = arith.constant 0 : index
    %c0_2 = arith.constant 0 : index
    %1 = vector.load %arg3[%c0_1, %c0_2] : memref<16x30xf32, #tpu.memory_space<vmem>>, vector<16x30xf32>
    %cst = arith.constant dense<0.000000e+00> : vector<104x30xf32>
    %2 = tpu.matmul %0, %1, %cst {dimension_numbers = #tpu.dot_dimension_numbers<[1], [0], [0], [1], [0, 0, 1, 1], [], []>} : vector<104x16xf32>, vector<16x30xf32>, vector<104x30xf32> -> vector<104x30xf32>
    %c0_3 = arith.constant 0 : index
    %c0_4 = arith.constant 0 : index
    %3 = vector.load %arg2[%c0_3, %c0_4] : memref<104x4xf32, #tpu.memory_space<vmem>>, vector<104x4xf32>
    %c0_5 = arith.constant 0 : index
    %c0_6 = arith.constant 0 : index
    %4 = vector.load %arg4[%c0_5, %c0_6] : memref<4x30xf32, #tpu.memory_space<vmem>>, vector<4x30xf32>
    %cst_7 = arith.constant dense<0.000000e+00> : vector<104x30xf32>
    %5 = tpu.matmul %3, %4, %cst_7 {dimension_numbers = #tpu.dot_dimension_numbers<[1], [0], [0], [1], [0, 0, 1, 1], [], []>} : vector<104x4xf32>, vector<4x30xf32>, vector<104x30xf32> -> vector<104x30xf32>
    %6 = arith.addf %2, %5 : vector<104x30xf32>
    %c0_8 = arith.constant 0 : index
    %c0_9 = arith.constant 0 : index
    %7 = vector.load %arg5[%c0_8, %c0_9] : memref<1x30xf32, #tpu.memory_space<vmem>>, vector<1x30xf32>
    %8 = vector.broadcast %7 : vector<1x30xf32> to vector<104x30xf32>
    %9 = arith.addf %6, %8 : vector<104x30xf32>
    %cst_10 = arith.constant 0.000000e+00 : f32
    %10 = vector.broadcast %cst_10 : f32 to vector<104x30xf32>
    %11 = arith.maximumf %9, %10 : vector<104x30xf32>
    %c0_11 = arith.constant 0 : index
    %c0_12 = arith.constant 0 : index
    %12 = vector.load %arg6[%c0_11, %c0_12] : memref<1x30xf32, #tpu.memory_space<vmem>>, vector<1x30xf32>
    %cst_13 = arith.constant dense<0.000000e+00> : vector<1x104xf32>
    %13 = tpu.matmul %12, %11, %cst_13 {dimension_numbers = #tpu.dot_dimension_numbers<[1], [1], [0], [0], [0, 0, 1, 0], [], []>} : vector<1x30xf32>, vector<104x30xf32>, vector<1x104xf32> -> vector<1x104xf32>
    %c0_14 = arith.constant 0 : index
    %c0_15 = arith.constant 0 : index
    %14 = memref.load %arg7[%c0_14, %c0_15] : memref<1x1xf32, #tpu.memory_space<smem>>
    %15 = vector.broadcast %14 : f32 to vector<1x104xf32>
    %16 = arith.addf %13, %15 : vector<1x104xf32>
    %c0_16 = arith.constant 0 : index
    %c0_17 = arith.constant 0 : index
    %c0_18 = arith.constant 0 : index
    %17 = vector.load %arg8[%c0_16, %c0_17, %c0_18] : memref<1x1x104xf32, #tpu.memory_space<vmem>>, vector<1x1x104xf32>
    %18 = vector.shape_cast %17 : vector<1x1x104xf32> to vector<1x104xf32>
    %19 = vector.shape_cast %16 : vector<1x104xf32> to vector<1x1x104xf32>
    tpu.vector_store %arg8[%c0_16, %c0_17, %c0_18], %19 {strides = array<i32>} : memref<1x1x104xf32, #tpu.memory_space<vmem>>, vector<1x1x104xf32>,
    return
  }
  func.func @transform_0(%arg0: i32) -> (i32, i32) {
    %c0_i32 = arith.constant 0 : i32
    %c0_i32_0 = arith.constant 0 : i32
    return %arg0, %c0_i32 : i32, i32
  }
  func.func @transform_1(%arg0: i32) -> (i32, i32) {
    %c0_i32 = arith.constant 0 : i32
    %c0_i32_0 = arith.constant 0 : i32
    return %arg0, %c0_i32 : i32, i32
  }
  func.func @transform_2(%arg0: i32) -> (i32, i32) {
    %c0_i32 = arith.constant 0 : i32
    %c0_i32_0 = arith.constant 0 : i32
    %c0_i32_1 = arith.constant 0 : i32
    return %c0_i32, %c0_i32_0 : i32, i32
  }
  func.func @transform_3(%arg0: i32) -> (i32, i32) {
    %c0_i32 = arith.constant 0 : i32
    %c0_i32_0 = arith.constant 0 : i32
    %c0_i32_1 = arith.constant 0 : i32
    return %c0_i32, %c0_i32_0 : i32, i32
  }
  func.func @transform_4(%arg0: i32) -> (i32, i32) {
    %c0_i32 = arith.constant 0 : i32
    %c0_i32_0 = arith.constant 0 : i32
    %c0_i32_1 = arith.constant 0 : i32
    return %c0_i32, %c0_i32_0 : i32, i32
  }
  func.func @transform_5(%arg0: i32) -> (i32, i32) {
    %c0_i32 = arith.constant 0 : i32
    %c0_i32_0 = arith.constant 0 : i32
    %c0_i32_1 = arith.constant 0 : i32
    return %c0_i32, %c0_i32_0 : i32, i32
  }
  func.func @transform_6(%arg0: i32) -> (i32, i32) {
    %c0_i32 = arith.constant 0 : i32
    %c0_i32_0 = arith.constant 0 : i32
    %c0_i32_1 = arith.constant 0 : i32
    return %c0_i32, %c0_i32_0 : i32, i32
  }
  func.func @transform_7(%arg0: i32) -> (i32, i32, i32) {
    %c0_i32 = arith.constant 0 : i32
    %c0_i32_0 = arith.constant 0 : i32
    %c0_i32_1 = arith.constant 0 : i32
    return %arg0, %c0_i32, %c0_i32_0 : i32, i32, i32
  }
}

</mosaic_0001>

<bundles_post_ra>
// kernel: tpu_custom_call.1
= control target key start
LH: loop header
LB: loop body
LE: loop exit
PB: predicated region body
PF: predicated region fallthrough
CT: control target
= control target key end

     0   :  { %s1603_s0 = inlined_call_operand.vmem [shape: f32[200,16], index: 0, kind: input, shape index: {}]   ;;  %s1604_s1 = inlined_call_operand.vmem [shape: f32[200,4], index: 1, kind: input, shape index: {}]   ;;  %s1605_s2 = inlined_call_operand.vmem [shape: f32[16,30], index: 2, kind: input, shape index: {}]   ;;  %s1606_s3 = inlined_call_operand.vmem [shape: f32[4,30], index: 3, kind: input, shape index: {}]   ;;  %s1607_s4 = inlined_call_operand.vmem [shape: f32[1,30], index: 4, kind: input, shape index: {}]   ;;  %s1608_s5 = inlined_call_operand.vmem [shape: f32[1,30], index: 5, kind: input, shape index: {}]   ;;  %s1609_s6 = inlined_call_operand.<no memory space> [shape: f32[1,1], index: 6, kind: input, shape index: {}]   ;;  %s1610_s7 = inlined_call_operand.hbm [shape: f32[2,1,104], index: 7, kind: output, shape index: {}]  }
   0x1   :  { %12 = sst [smem:[#allocation2]] %s1609_s6 }
   0x2   :  { %13 = vsyncpa [#allocation4], 0 }
   0x3   :  { %15 = vsyncpa [#allocation4 + $0x1], 0  ;;  %s1332_s26 = smov 0   ;;  %s1334_s27 = smov 0  }
   0x4   :  { %s1336_s28 = smov 0   ;;  %s1338_s29 = smov 0  }
   0x5 LB: > { %s1353_s6 = sadd.s32 4294967295, %s1283_s29   ;;  %s945_s30 = sadd.s32 4294967294, %s1283_s29   ;;  %s1283_s29 = sphi %s1338_s29, %s1618_s29   ;;  %s1279_s28 = sphi %s1336_s28, %s1617_s28   ;;  %s1275_s27 = sphi %s1334_s27, %s1616_s27   ;;  %s1271_s26 = sphi %s1332_s26, %s1615_s26  }
   0x6   : > { %s1357_s8 = sadd.s32 1, %s1283_s29   ;;  %s185_s9 = sadd.s32 1, %s1279_s28 }
   0x7   : > { %s182_s10 = ssub.s32 %s1283_s29, %s1357_s8  ;;  %p195_p0 = scmp.ne.s32.totalorder %s1279_s28, %s1275_s27 }
   0x8   : > { %p183_p1 = scmp.eq.s32.totalorder %s182_s10, 0  ;;  %p196_p2 = scmp.eq.s32.totalorder %s1353_s6, 1 }
   0x9   : > { %p201_p3 = scmp.ne.s32.totalorder %s1275_s27, %s1271_s26  ;;  %p202_p4 = scmp.eq.s32.totalorder %s945_s30, 1 }
   0xa   : > { %s1368_s11 = scalar_select %p183_p1, %s1279_s28, %s185_s9  }
   0xb   : > { %p1370_p5 = por %p196_p2, %p195_p0  ;;  %p1374_p6 = por %p202_p4, %p201_p3 }
   0xc   : > { %p948_p7 = scmp.ge.s32.totalorder %s1283_s29, 1  ;;  %p269_p8 = scmp.lt.s32.totalorder %s1283_s29, 3 }
   0xe   : > { %p270_p9 = pnand %p948_p7, %p269_p8 }
   0xf   : > { %v354_v0 = vld [vmem:[%s1605_s2] sm:$0xff] (!%p270_p9)  ;;  %v355_v1 = vld [vmem:[%s1605_s2 + $0x8] sm:$0xff] (!%p270_p9)  ;;  %v1285_v3 = vmov (!%p270_p9), 0.0|0.0   ;;  %v1286_v5 = vmov (!%p270_p9), 0.0   ;;  %vm410_vm0 = vcmask (!%p270_p9), 1043456   ;;  %s313_s20 = smul.u32 (!%p270_p9), 13, %s1353_s6 }
  0x10   : > { %273 = sbr.rel (%p270_p9) target bundleno = 531 (0x213), region = 48  ;;  %v369_v2 = vld [vmem:[%s1606_s3] sm:$0xf] (!%p270_p9)  ;;  %1152 = vmatprep.subr.bf16.mxu1 (!%p270_p9), %v1285_v3  ;;  %v1153_v4 = vpack.c.bf16 (!%p270_p9), %v355_v1, %v354_v0  ;;  %1039 = vmatprep.subr.mxu0 (!%p270_p9), %v1286_v5  ;;  %vm1287_vm1 = vmmov (!%p270_p9), 0   ;;  %vm370_vm2 = vcmask (!%p270_p9), 31744   ;;  %vm544_vm3 = vcmask (!%p270_p9), 130048  }
  0x11   : > { %1040 = vmatpush3.msk.msra.mxu0 (!%p270_p9), %vm410_vm0, %v369_v2  ;;  %1041 = vmatprep.mubr.msk.f32.mxu0 (!%p270_p9), %vm1287_vm1, %v1286_v5  ;;  %p318_p10 = scmp.lt.s32.totalorder (!%p270_p9), %s313_s20, 24  ;;  %v1512_v37 = vld [vmem:[%s1607_s4] ss:$0 sm:$0xff] (!%p270_p9)  ;;  %vm750_vm4 = vcmask (!%p270_p9), 244736   ;;  %s748_s17 = sld [smem:[#allocation2]] (!%p270_p9)  ;;  %vm863_vm6 = vcmask (!%p270_p9), 843776  }
  0x12   : > { %1154 = vmatpush3.bf16.msra.mxu1 (!%p270_p9), %v1153_v4  ;;  %1084 = vmatprep.mubr.msk.f32.mxu1 (!%p270_p9), %vm1287_vm1, %v1286_v5  ;;  %vm1518_vm5 = vmpackc.low (!%p270_p9), %vm750_vm4, %vm750_vm4  ;;  %s311_s18 = sand.u32 (!%p270_p9), 1, %s1275_s27   ;;  %s993_s19 = sshll.u32 (!%p270_p9), %s1353_s6, 4 }
  0x13   : > { %1155 = vmatprep.subr.bf16.mxu0 (!%p270_p9), %v1285_v3  ;;  %s866_s25 = scalar_lea.sflag (!%p270_p9), [#allocation4], %s311_s18  ;;  %s1288_s6 = smov (!%p270_p9), [#allocation3]  }
  0x17   : > { %s1620_s20 = smov (!%p318_p10, %s313_s20), 24 }
  0x18   : > { %s949_s21 = sshll.u32 %s1620_s20, 3  ;;  %s312_s20 = scalar_lea.vmem [#allocation3], %s311_s18 }
  0x19   : > { %s1400_s24 = scalar_lea.vmem %s1604_s1, %s949_s21  ;;  %s1405_s9 = scalar_lea.vmem %s1603_s0, %s949_s21 }
  0x1a   : > { %v356_v6 = vld [vmem:[%s1400_s24] sm:$0xff]  ;;  %v357_v8 = vld [vmem:[%s1400_s24 + $0x8] sm:$0xff]  ;;  %v358_v10 = vld [vmem:[%s1400_s24 + $0x10] sm:$0xff]  ;;  %s878_s21 = sshll.u32 %s312_s20, 4  ;;  %s1563_s21 = int_to_ptr.vmem [resolvable:$true] %s878_s21 }
  0x1b   : > { %v341_v7 = vld [vmem:[%s1405_s9] sm:$0xff]  ;;  %1042 = vmatmul.mubr.msk.f32.vlgmr.msra.gmra.mrb[0].mxu0 %vm370_vm2, %v356_v6  ;;  %v342_v9 = vld [vmem:[%s1405_s9 + $0x8] sm:$0xff]  ;;  %v343_v11 = vld [vmem:[%s1405_s9 + $0x10] sm:$0xff]  ;;  %s1221_s30 = scalar_lea.vmem %s1563_s21, 16 }
  0x1c   : > { %1085 = vmatmul.mubr.msk.f32.vlgmr.msra.gmra.mrb[0].mxu1 %vm544_vm3, %v341_v7  ;;  %1044 = vmatprep.mubr.msk.f32.mxu0 %vm1287_vm1, %v1286_v5  ;;  %v359_v12 = vld [vmem:[%s1400_s24 + $0x18] sm:$0xff]  ;;  %v360_v14 = vld [vmem:[%s1400_s24 + $0x20] sm:$0xff]  ;;  %v361_v16 = vld [vmem:[%s1400_s24 + $0x28] sm:$0xff]  ;;  %p1222_p11 = scmp.ne.s32.totalorder %s1563_s21, %s1221_s30 }
  0x1d   : > { %1087 = vmatprep.mubr.msk.f32.mxu1 %vm1287_vm1, %v1286_v5  ;;  %v344_v13 = vld [vmem:[%s1405_s9 + $0x18] sm:$0xff]  ;;  %v345_v15 = vld [vmem:[%s1405_s9 + $0x20] sm:$0xff]  ;;  %v346_v17 = vld [vmem:[%s1405_s9 + $0x28] sm:$0xff] }
  0x1e   : > { %v362_v18 = vld [vmem:[%s1400_s24 + $0x30] sm:$0xff]  ;;  %v363_v20 = vld [vmem:[%s1400_s24 + $0x38] sm:$0xff]  ;;  %v364_v22 = vld [vmem:[%s1400_s24 + $0x40] sm:$0xff]  ;;  %p1223_p12 = pnand %p1222_p11, %p1370_p5 }
  0x1f   : > { %1045 = vmatmul.mubr.msk.f32.gmra.mrb[2].mxu0 %vm370_vm2, %v357_v8  ;;  %v347_v19 = vld [vmem:[%s1405_s9 + $0x30] sm:$0xff]  ;;  %v348_v21 = vld [vmem:[%s1405_s9 + $0x38] sm:$0xff]  ;;  %v349_v23 = vld [vmem:[%s1405_s9 + $0x40] sm:$0xff] }
  0x20   : > { %1088 = vmatmul.mubr.msk.f32.gmra.mrb[2].mxu1 %vm544_vm3, %v342_v9  ;;  %1047 = vmatprep.mubr.msk.f32.mxu0 %vm1287_vm1, %v1286_v5  ;;  %v365_v24 = vld [vmem:[%s1400_s24 + $0x48] sm:$0xff]  ;;  %v366_v26 = vld [vmem:[%s1400_s24 + $0x50] sm:$0xff]  ;;  %v367_v28 = vld [vmem:[%s1400_s24 + $0x58] sm:$0xff]  ;;  %p1224_p13 = pneg %p1223_p12 }
  0x21   : > { %1090 = vmatprep.mubr.msk.f32.mxu1 %vm1287_vm1, %v1286_v5  ;;  %v350_v25 = vld [vmem:[%s1405_s9 + $0x48] sm:$0xff]  ;;  %v351_v27 = vld [vmem:[%s1405_s9 + $0x50] sm:$0xff]  ;;  %v352_v29 = vld [vmem:[%s1405_s9 + $0x58] sm:$0xff] }
  0x22   : > { %v368_v30 = vld [vmem:[%s1400_s24 + $0x60] sm:$0xff]  ;;  %s1561_s24 = scalar_lea.hbm %s1610_s7, %s993_s19 }
  0x23   : > { %1048 = vmatmul.mubr.msk.f32.gmra.mrb[4].mxu0 %vm370_vm2, %v358_v10  ;;  %v353_v31 = vld [vmem:[%s1405_s9 + $0x60] sm:$0xff]  ;;  %s1225_s9 = sshll.u32 %s1288_s6, 4  ;;  %s1226_s9 = int_to_ptr.vmem [resolvable:$false] %s1225_s9 }
  0x24   : > { %1091 = vmatmul.mubr.msk.f32.gmra.mrb[4].mxu1 %vm544_vm3, %v343_v11  ;;  %1050 = vmatprep.mubr.msk.f32.mxu0 %vm1287_vm1, %v1286_v5  ;;  %s1227_s10 = scalar_lea.vmem %s1226_s9, 32  ;;  %p1228_p0 = scmp.lt.s32.totalorder %s1563_s21, %s1226_s9 }
  0x25   : > { %1093 = vmatprep.mubr.msk.f32.mxu1 %vm1287_vm1, %v1286_v5  ;;  %p1229_p1 = scmp.lt.s32.totalorder %s1227_s10, %s1221_s30 }
  0x27   : > { %1051 = vmatmul.mubr.msk.f32.gmra.mrb[6].mxu0 %vm370_vm2, %v359_v12  ;;  %p1230_p2 = por %p1229_p1, %p1228_p0 }
  0x28   : > { %1094 = vmatmul.mubr.msk.f32.gmra.mrb[6].mxu1 %vm544_vm3, %v344_v13  ;;  %1053 = vmatprep.mubr.msk.f32.mxu0 %vm1287_vm1, %v1286_v5 }
  0x29   : > { %1096 = vmatprep.mubr.msk.f32.mxu1 %vm1287_vm1, %v1286_v5  ;;  %p1231_p3 = pnand %p1230_p2, %p1224_p13 }
  0x2b   : > { %1054 = vmatmul.mubr.msk.f32.gmra.mrb[8].mxu0 %vm370_vm2, %v360_v14 }
  0x2c   : > { %1097 = vmatmul.mubr.msk.f32.gmra.mrb[8].mxu1 %vm544_vm3, %v345_v15  ;;  %1056 = vmatprep.mubr.msk.f32.mxu0 %vm1287_vm1, %v1286_v5 }
  0x2d   : > { %1099 = vmatprep.mubr.msk.f32.mxu1 %vm1287_vm1, %v1286_v5 }
  0x2f   : > { %1057 = vmatmul.mubr.msk.f32.gmra.mrb[10].mxu0 %vm370_vm2, %v361_v16 }
  0x30   : > { %1100 = vmatmul.mubr.msk.f32.gmra.mrb[10].mxu1 %vm544_vm3, %v346_v17  ;;  %1059 = vmatprep.mubr.msk.f32.mxu0 %vm1287_vm1, %v1286_v5 }
  0x31   : > { %1102 = vmatprep.mubr.msk.f32.mxu1 %vm1287_vm1, %v1286_v5 }
  0x33   : > { %1060 = vmatmul.mubr.msk.f32.gmra.mrb[12].mxu0 %vm370_vm2, %v362_v18 }
  0x34   : > { %1103 = vmatmul.mubr.msk.f32.gmra.mrb[12].mxu1 %vm544_vm3, %v347_v19  ;;  %1062 = vmatprep.mubr.msk.f32.mxu0 %vm1287_vm1, %v1286_v5 }
  0x35   : > { %1105 = vmatprep.mubr.msk.f32.mxu1 %vm1287_vm1, %v1286_v5 }
  0x37   : > { %1063 = vmatmul.mubr.msk.f32.gmra.mrb[14].mxu0 %vm370_vm2, %v363_v20 }
  0x38   : > { %1106 = vmatmul.mubr.msk.f32.gmra.mrb[14].mxu1 %vm544_vm3, %v348_v21  ;;  %1065 = vmatprep.mubr.msk.f32.mxu0 %vm1287_vm1, %v1286_v5 }
  0x39   : > { %1108 = vmatprep.mubr.msk.f32.mxu1 %vm1287_vm1, %v1286_v5 }
  0x3b   : > { %1066 = vmatmul.mubr.msk.f32.gmra.mrb[16].mxu0 %vm370_vm2, %v364_v22 }
  0x3c   : > { %1109 = vmatmul.mubr.msk.f32.gmra.mrb[16].mxu1 %vm544_vm3, %v349_v23  ;;  %1068 = vmatprep.mubr.msk.f32.mxu0 %vm1287_vm1, %v1286_v5 }
  0x3d   : > { %1111 = vmatprep.mubr.msk.f32.mxu1 %vm1287_vm1, %v1286_v5 }
  0x3f   : > { %1069 = vmatmul.mubr.msk.f32.gmra.mrb[18].mxu0 %vm370_vm2, %v365_v24 }
  0x40   : > { %1112 = vmatmul.mubr.msk.f32.gmra.mrb[18].mxu1 %vm544_vm3, %v350_v25  ;;  %1071 = vmatprep.mubr.msk.f32.mxu0 %vm1287_vm1, %v1286_v5 }
  0x41   : > { %1114 = vmatprep.mubr.msk.f32.mxu1 %vm1287_vm1, %v1286_v5 }
  0x43   : > { %1072 = vmatmul.mubr.msk.f32.gmra.mrb[20].mxu0 %vm370_vm2, %v366_v26 }
  0x44   : > { %1115 = vmatmul.mubr.msk.f32.gmra.mrb[20].mxu1 %vm544_vm3, %v351_v27  ;;  %1074 = vmatprep.mubr.msk.f32.mxu0 %vm1287_vm1, %v1286_v5 }
  0x45   : > { %1117 = vmatprep.mubr.msk.f32.mxu1 %vm1287_vm1, %v1286_v5 }
  0x47   : > { %1075 = vmatmul.mubr.msk.f32.gmra.mrb[22].mxu0 %vm370_vm2, %v367_v28 }
  0x48   : > { %1118 = vmatmul.mubr.msk.f32.gmra.mrb[22].mxu1 %vm544_vm3, %v352_v29  ;;  %1077 = vmatprep.mubr.msk.f32.mxu0 %vm1287_vm1, %v1286_v5 }
  0x49   : > { %1120 = vmatprep.mubr.msk.f32.mxu1 %vm1287_vm1, %v1286_v5 }
  0x4b   : > { %1078 = vmatmul.mubr.msk.f32.gmra.mrb[24].mxu0 %vm370_vm2, %v368_v30 }
  0x4c   : > { %1121 = vmatmul.mubr.msk.f32.gmra.mrb[24].mxu1 %vm544_vm3, %v353_v31  ;;  %1149 = vmatprep.mubr.msk.f32.mxu0 %vm1287_vm1, %v1286_v5 }
  0xee   : > { %v480_v32 = vpop.f32.mrb[0].mxu0 }
  0xef   : > { %v650_v33 = vpop.f32.mrb[0].mxu1  ;;  %v1043_v35 = vpop.f32.mrb[1].mxu0 }
  0xf0   : > { %v651_v34 = vadd.f32 %v650_v33, %v480_v32  ;;  %v1086_v36 = vpop.f32.mrb[1].mxu1 }
  0xf2   : > { %v485_v38 = vpop.f32.mrb[2].mxu0  ;;  %v721_v40 = vadd.f32 %v1512_v37, %v651_v34 }
  0xf3   : > { %v655_v39 = vpop.f32.mrb[2].mxu1  ;;  %v1046_v42 = vpop.f32.mrb[3].mxu0 }
  0xf4   : > { %v656_v41 = vadd.f32 %v655_v39, %v485_v38  ;;  %v1089_v43 = vpop.f32.mrb[3].mxu1  ;;  %v734_v47 = vmax.f32 %v721_v40, 0.0 }
  0xf6   : > { %v722_v44 = vadd.f32 %v1512_v37, %v656_v41  ;;  %v490_v45 = vpop.f32.mrb[4].mxu0 }
  0xf7   : > { %v660_v46 = vpop.f32.mrb[4].mxu1  ;;  %v1049_v50 = vpop.f32.mrb[5].mxu0 }
  0xf8   : > { %v735_v48 = vmax.f32 %v722_v44, 0.0  ;;  %v661_v49 = vadd.f32 %v660_v46, %v490_v45  ;;  %v1092_v51 = vpop.f32.mrb[5].mxu1 }
  0xfa   : > { %v1156_v53 = vpack.c.bf16 %v735_v48, %v734_v47  ;;  %v495_v54 = vpop.f32.mrb[6].mxu0  ;;  %v723_v56 = vadd.f32 %v1512_v37, %v661_v49 }
  0xfb   : > { %v665_v55 = vpop.f32.mrb[6].mxu1  ;;  %v1052_v58 = vpop.f32.mrb[7].mxu0 }
  0xfc   : > { %v666_v57 = vadd.f32 %v665_v55, %v495_v54  ;;  %v1095_v59 = vpop.f32.mrb[7].mxu1  ;;  %1158 = vmatpush3.bf16.xpose.msk.msra.mxu0 %vm1518_vm5, %v1156_v53  ;;  %v736_v63 = vmax.f32 %v723_v56, 0.0 }
  0xfd   : > { %1159 = vmatprep.subr.bf16.mxu0 %v1285_v3 }
  0xfe   : > { %v724_v60 = vadd.f32 %v1512_v37, %v666_v57  ;;  %v500_v61 = vpop.f32.mrb[8].mxu0 }
  0xff   : > { %v670_v62 = vpop.f32.mrb[8].mxu1  ;;  %v1055_v2 = vpop.f32.mrb[9].mxu0 }
 0x100   : > { %v737_v0 = vmax.f32 %v724_v60, 0.0  ;;  %v671_v1 = vadd.f32 %v670_v62, %v500_v61  ;;  %v1098_v4 = vpop.f32.mrb[9].mxu1 }
 0x102   : > { %v1160_v6 = vpack.c.bf16 %v737_v0, %v736_v63  ;;  %v505_v7 = vpop.f32.mrb[10].mxu0  ;;  %v725_v9 = vadd.f32 %v1512_v37, %v671_v1 }
 0x103   : > { %v675_v8 = vpop.f32.mrb[10].mxu1  ;;  %v1058_v11 = vpop.f32.mrb[11].mxu0 }
 0x104   : > { %v676_v10 = vadd.f32 %v675_v8, %v505_v7  ;;  %v1101_v12 = vpop.f32.mrb[11].mxu1  ;;  %1162 = vmatpush3.bf16.xpose.msk.msra.mxu0 %vm1518_vm5, %v1160_v6  ;;  %v738_v16 = vmax.f32 %v725_v9, 0.0  ;;  %v747_v8 = vld [vmem:[%s1608_s5] sm:$0x1]  ;;  %v749_v9 = vstv %s748_s17 }
 0x105   : > { %1163 = vmatprep.subr.bf16.mxu0 %v1285_v3 }
 0x106   : > { %v726_v13 = vadd.f32 %v1512_v37, %v676_v10  ;;  %v510_v14 = vpop.f32.mrb[12].mxu0 }
 0x107   : > { %v680_v15 = vpop.f32.mrb[12].mxu1  ;;  %v1061_v19 = vpop.f32.mrb[13].mxu0 }
 0x108   : > { %v739_v17 = vmax.f32 %v726_v13, 0.0  ;;  %v681_v18 = vadd.f32 %v680_v15, %v510_v14  ;;  %v1104_v20 = vpop.f32.mrb[13].mxu1 }
 0x10a   : > { %v1164_v21 = vpack.c.bf16 %v739_v17, %v738_v16  ;;  %v515_v22 = vpop.f32.mrb[14].mxu0  ;;  %v727_v24 = vadd.f32 %v1512_v37, %v681_v18 }
 0x10b   : > { %v685_v23 = vpop.f32.mrb[14].mxu1  ;;  %v1064_v26 = vpop.f32.mrb[15].mxu0 }
 0x10c   : > { %v686_v25 = vadd.f32 %v685_v23, %v515_v22  ;;  %v1107_v27 = vpop.f32.mrb[15].mxu1  ;;  %1166 = vmatpush3.bf16.xpose.msk.msra.mxu0 %vm1518_vm5, %v1164_v21  ;;  %v740_v31 = vmax.f32 %v727_v24, 0.0 }
 0x10d   : > { %1167 = vmatprep.subr.bf16.mxu0 %v1285_v3 }
 0x10e   : > { %v728_v28 = vadd.f32 %v1512_v37, %v686_v25  ;;  %v520_v29 = vpop.f32.mrb[16].mxu0 }
 0x10f   : > { %v690_v30 = vpop.f32.mrb[16].mxu1  ;;  %v1067_v34 = vpop.f32.mrb[17].mxu0 }
 0x110   : > { %v741_v32 = vmax.f32 %v728_v28, 0.0  ;;  %v691_v33 = vadd.f32 %v690_v30, %v520_v29  ;;  %v1110_v35 = vpop.f32.mrb[17].mxu1 }
 0x112   : > { %v1168_v36 = vpack.c.bf16 %v741_v32, %v740_v31  ;;  %v525_v38 = vpop.f32.mrb[18].mxu0  ;;  %v729_v40 = vadd.f32 %v1512_v37, %v691_v33 }
 0x113   : > { %v695_v39 = vpop.f32.mrb[18].mxu1  ;;  %v1070_v42 = vpop.f32.mrb[19].mxu0 }
 0x114   : > { %v696_v41 = vadd.f32 %v695_v39, %v525_v38  ;;  %v1113_v43 = vpop.f32.mrb[19].mxu1  ;;  %1170 = vmatpush3.bf16.xpose.msk.msra.mxu0 %vm1518_vm5, %v1168_v36  ;;  %v742_v47 = vmax.f32 %v729_v40, 0.0 }
 0x115   : > { %1171 = vmatprep.subr.bf16.mxu0 %v1285_v3 }
 0x116   : > { %v730_v44 = vadd.f32 %v1512_v37, %v696_v41  ;;  %v530_v45 = vpop.f32.mrb[20].mxu0 }
 0x117   : > { %v700_v46 = vpop.f32.mrb[20].mxu1  ;;  %v1073_v50 = vpop.f32.mrb[21].mxu0 }
 0x118   : > { %v743_v48 = vmax.f32 %v730_v44, 0.0  ;;  %v701_v49 = vadd.f32 %v700_v46, %v530_v45  ;;  %v1116_v51 = vpop.f32.mrb[21].mxu1 }
 0x11a   : > { %v1172_v53 = vpack.c.bf16 %v743_v48, %v742_v47  ;;  %v535_v54 = vpop.f32.mrb[22].mxu0  ;;  %v731_v56 = vadd.f32 %v1512_v37, %v701_v49 }
 0x11b   : > { %v705_v55 = vpop.f32.mrb[22].mxu1  ;;  %v1076_v58 = vpop.f32.mrb[23].mxu0 }
 0x11c   : > { %v706_v57 = vadd.f32 %v705_v55, %v535_v54  ;;  %v1119_v59 = vpop.f32.mrb[23].mxu1  ;;  %1174 = vmatpush3.bf16.xpose.msk.msra.mxu0 %vm1518_vm5, %v1172_v53  ;;  %v744_v63 = vmax.f32 %v731_v56, 0.0 }
 0x11d   : > { %1175 = vmatprep.subr.bf16.mxu0 %v1285_v3 }
 0x11e   : > { %v732_v60 = vadd.f32 %v1512_v37, %v706_v57  ;;  %v540_v61 = vpop.f32.mrb[24].mxu0 }
 0x11f   : > { %v710_v62 = vpop.f32.mrb[24].mxu1  ;;  %v1079_v2 = vpop.f32.mrb[25].mxu0 }
 0x120   : > { %v745_v0 = vmax.f32 %v732_v60, 0.0  ;;  %v711_v1 = vadd.f32 %v710_v62, %v540_v61  ;;  %v1122_v4 = vpop.f32.mrb[25].mxu1 }
 0x122   : > { %v1176_v6 = vpack.c.bf16 %v745_v0, %v744_v63  ;;  %v733_v7 = vadd.f32 %v1512_v37, %v711_v1 }
 0x124   : > { %1178 = vmatpush3.bf16.xpose.msk.msra.mxu0 %vm1518_vm5, %v1176_v6  ;;  %v746_v3 = vmax.f32 %v733_v7, 0.0 }
 0x125   : > { %1147 = vmatprep.subr.mxu0 %v1286_v5 }
 0x12c   : > { %1148 = vmatpush3.xpose.msk.msra.mxu0 %vm750_vm4, %v746_v3 }
 0x12f   : > { %1150 = vmatmul.mubr.msk.f32.vlgmr.msra.gmra.mrb[26].mxu0 %vm750_vm4, %v747_v8 }
 0x202   : > { %v859_v37 = vpop.f32.mrb[26].mxu0 }
 0x203   : > { %v860_v52 = vadd.f32 %v859_v37, %v749_v9  ;;  %v1151_v5 = vpop.f32.mrb[27].mxu0 }
 0x205   : > { %864 = vst.msk [vmem:[%s312_s20] sm:$0x1] %vm863_vm6, %v860_v52 }
 0x206   : > { %1234 = shalt.err (!%p1231_p3)
}
 0x207   : > { %s1235_s14 = scalar_lea.hbm %s1561_s24, 16  ;;  %s1239_s17 = scalar_lea.hbm %s1610_s7, 32 }
 0x208   : > { %p1236_p4 = scmp.ne.s32.totalorder %s1561_s24, %s1235_s14  ;;  %p1240_p9 = scmp.lt.u32.totalorder %s1561_s24, %s1610_s7 }
 0x209   : > { %p1241_p10 = scmp.lt.u32.totalorder %s1239_s17, %s1235_s14  ;;  %p1243_p12 = scmp.lt.u32.totalorder %s1235_s14, %s1561_s24 }
 0x20a   : > { %p1237_p7 = pnand %p1236_p4, %p1370_p5 }
 0x20b   : > { %p1242_p11 = por %p1241_p10, %p1240_p9 }
 0x20c   : > { %p1238_p8 = pneg %p1237_p7 }
 0x20d   : > { %p1244_p13 = por %p1243_p12, %p1242_p11 }
 0x20f   : > { %p1245_p0 = pnand %p1244_p13, %p1238_p8 }
 0x211   : > { %1248 = shalt.err (!%p1245_p0)
}
 0x212   : > { %1179 = dma.vmem_to_hbm [thread:$0]  (%p1370_p5), %s1563_s21, 16, %s1561_s24, %s866_s25  }
 0x213 PF: > { %p1185_p1 = scmp.ge.s32.totalorder %s1283_s29, 2  ;;  %s890_s20 = sand.u32 1, %s1271_s26  }
 0x214   : > { %s891_s22 = scalar_lea.sflag [#allocation4], %s890_s20 }
 0x215   : > { %p1182_p2 = pnand %p1185_p1, %p1374_p6 }
 0x217   : > { %1266 = dma.done.wait (!%p1182_p2), %s891_s22, 16  }
 0x218   : > { %1268 = vsyncadd (!%p1182_p2), %s891_s22, 4294967280  ;;  %p18_p3 = scmp.ge.s32.totalorder %s1357_s8, 4   ;;  %s1615_s26 = smov %s1275_s27 }
 0x219   : > { %s1616_s27 = smov %s1279_s28  ;;  %s1617_s28 = smov %s1368_s11 }
 0x21a   : > { %s1618_s29 = smov %s1357_s8  ;;  %20 = sbr.rel (!%p18_p3) target bundleno = 5 (0x5), region = 86 }
 0x221   :  { %895 = vsyncpa [#allocation4], 1 }
 0x222   :  { %897 = vsyncpa [#allocation4 + $0x1], 1 }

</bundles_post_ra>
